<compile_context>
chip_gen: v7x
topology: tpu7x:2x2x1
jax: 0.10.0
libtpu: 0.0.40
codegen_flags: <defaults>
</compile_context>

<pallas_src>
import functools

import jax
import jax.numpy as jnp
import numpy as np
from jax import lax
from jax.experimental import pallas as pl
from jax.experimental.pallas import tpu as pltpu


def _round_up(n: int, m: int) -> int:
    return ((n + m - 1) // m) * m


def _entropy_head_kernel(x_ref, w_ref, b_ref, out_ref, *, inv_ln2_max_entropy: float):
    xv = x_ref[...]
    wv = w_ref[...]
    if xv.dtype != wv.dtype:
        # bf16 MXU feed from an f32 x: cast the tile in VMEM (no extra HBM pass).
        xv = xv.astype(wv.dtype)

    # logits[tile_b, C] = x[tile_b, H] . W[C, H]^T  -- x (the large, streamed
    # operand) is the standard MXU LHS; the tiny weight is the stationary /
    # transposed side, which the MXU handles natively (no XLU transpose of x).
    logits = lax.dot_general(
        xv, wv,
        dimension_numbers=(((1,), (1,)), ((), ())),
        preferred_element_type=jnp.float32,
    )
    logits = logits + b_ref[...].astype(jnp.float32)            # bias [1, C] broadcast

    # Entropy straight from logits (log-sum-exp form):
    #   m = max_c l;  z = sum exp(l - m);  s = sum (l - m) exp(l - m)
    #   H_nats = log(z) - s / z
    m = jnp.max(logits, axis=1, keepdims=True)                  # [tile_b, 1]
    centered = logits - m
    e = jnp.exp(centered)
    z = jnp.sum(e, axis=1, keepdims=True)                       # [tile_b, 1]
    s = jnp.sum(centered * e, axis=1, keepdims=True)            # [tile_b, 1]
    ent = (jnp.log(z) - s * pl.reciprocal(z, approx=True)) * inv_ln2_max_entropy
    # torch.clamp(entropy, min=1e-9, max=1 - 1e-9); upper bound rounds to 1.0 in f32.
    out_ref[...] = jnp.clip(ent, 1e-9, 1.0 - 1e-9).astype(out_ref.dtype)


def _entropy_head_jnp(x, weight, bias, num_classes):
    """Reference / tiny-shape fallback (matches the torch forward incl. the +1e-8)."""
    logits = x.astype(jnp.float32) @ weight.astype(jnp.float32).T + bias.astype(jnp.float32)
    p = jax.nn.softmax(logits, axis=1)
    ent = jnp.sum(-p * jnp.log2(p + 1e-8), axis=-1) / np.log2(num_classes)
    return jnp.clip(ent, 1e-9, 1.0 - 1e-9)


def entropy_classifier_head(x, weight, bias, num_classes, *, tile_b=None,
                            matmul_dtype=None, use_pallas=True):
    """cls_head / cls_random forward path.

    x: [B, H] cls tokens, weight: [C, H] (PyTorch nn.Linear layout), bias: [C].
    Returns the normalized, clamped base-2 entropy of softmax(x @ W^T + b), shape [B].
    """
    B, H = x.shape
    C, Hw = weight.shape
    assert H == Hw and bias.shape == (C,)
    if num_classes < 2:
        raise ValueError("num_classes must be >= 2 (max_entropy = log2(num_classes) "
                         "would be 0 and the normalization would divide by zero)")
    max_entropy = float(np.log2(num_classes))   # non-trainable Parameter in the module

    if not use_pallas:
        # Tiny heads are launch/DMA-overhead dominated; plain XLA is the right answer.
        return _entropy_head_jnp(x, weight, bias, num_classes)

    # bf16 MXU inputs are only a win when x already arrives bf16 upstream, or when
    # explicitly requested (the x cast then happens inside the kernel, after the
    # DMA, so it never adds an extra HBM pass over x). Only the tiny weight is
    # cast in the wrapper. Accumulation and softmax/entropy math stay f32.
    if matmul_dtype is None and x.dtype == jnp.bfloat16:
        matmul_dtype = jnp.bfloat16
    if matmul_dtype is not None:
        weight = weight.astype(matmul_dtype)

    x_itemsize = int(np.dtype(x.dtype).itemsize)
    w_itemsize = int(np.dtype(weight.dtype).itemsize)

    if tile_b is None:
        # >= 2 grid steps so dimension_semantics=("parallel",) can split the batch
        # across both v7x TensorCores, but tiles large enough (<=1024 rows) to
        # amortize the ~0.35us per-step overhead.
        tile_b = min(1024, _round_up(max(1, pl.cdiv(B, 2)), 128))
        # VMEM budget (double-buffered x + up to 2 weight buffers) kept <= ~36 MiB
        # so the scoped-VMEM request below stays well under v7x's 64 MiB physical
        # VMEM (v5e/v6e have 128 MiB; callers may pass larger tile_b explicitly).
        budget = 36 * 1024 * 1024
        w_buf_bytes = 2 * C * H * w_itemsize
        per_row_bytes = 2 * H * x_itemsize
        max_rows = (budget - w_buf_bytes) // max(per_row_bytes, 1)
        max_rows = max(128, (max_rows // 128) * 128)
        tile_b = max(128, min(tile_b, max_rows))
    else:
        tile_b = max(128, _round_up(int(tile_b), 128))

    num_tiles = int(pl.cdiv(B, tile_b))          # no jnp.pad of x: Pallas boundary
                                                 # blocks handle the ragged tail
    bias2 = bias.reshape(1, C).astype(jnp.float32)

    kernel = functools.partial(
        _entropy_head_kernel,
        inv_ln2_max_entropy=float(1.0 / (np.log(2.0) * max_entropy)),
    )

    cost = pl.CostEstimate(
        flops=int(2 * B * H * C),
        transcendentals=int(B * (C + 2)),
        bytes_accessed=int(B * H * x_itemsize + C * H * w_itemsize + C * 4 + B * 4),
    )

    # Scoped-VMEM request derived from the actual tile footprint (+~50% slack),
    # not the full 64 MiB of a v7x TensorCore.
    est_bytes = (2 * tile_b * H * x_itemsize            # double-buffered x tiles
                 + 2 * C * H * w_itemsize               # weight buffers (1-2)
                 + 2 * _round_up(C, 128) * 4            # bias
                 + 2 * tile_b * 4)                      # output tiles
    vmem_limit_bytes = int(min(max(6 << 20, est_bytes * 3 // 2 + (1 << 20)), 112 << 20))

    compiler_params = pltpu.CompilerParams(
        dimension_semantics=("parallel",),   # batch tiles independent (v7x: 2 TCs)
        vmem_limit_bytes=vmem_limit_bytes,
    )
    out_shape = jax.ShapeDtypeStruct((B, 1), jnp.float32)

    out = None
    last_err = None
    # Weight/bias have constant index_maps -> request single buffering to free
    # C*H*itemsize of VMEM for bigger x tiles; fall back to the default
    # double-buffering if this JAX/Mosaic build rejects pl.Buffered(1).
    for single_buffer_weights in (True, False):
        try:
            if single_buffer_weights:
                w_spec = pl.BlockSpec((C, H), lambda i: (0, 0),
                                      pipeline_mode=pl.Buffered(1))
                b_spec = pl.BlockSpec((1, C), lambda i: (0, 0),
                                      pipeline_mode=pl.Buffered(1))
            else:
                w_spec = pl.BlockSpec((C, H), lambda i: (0, 0))
                b_spec = pl.BlockSpec((1, C), lambda i: (0, 0))
            out = pl.pallas_call(
                kernel,
                grid=(num_tiles,),
                in_specs=[
                    pl.BlockSpec((tile_b, H), lambda i: (i, 0)),   # x: streamed LHS
                    w_spec,                                        # W: VMEM-resident
                    b_spec,                                        # bias: VMEM-resident
                ],
                out_specs=pl.BlockSpec((tile_b, 1), lambda i: (i, 0)),
                out_shape=out_shape,
                compiler_params=compiler_params,
                cost_estimate=cost,
            )(x, weight, bias2)
            break
        except Exception as err:   # noqa: BLE001 - retry with default buffering
            last_err = err
            out = None
    if out is None:
        raise last_err

    # TODO(synk): add a class-axis (C) grid with an online log-sum-exp/entropy
    # accumulator (flash-style) once n_buf*C*H*itemsize + 2*tile_b*H*itemsize no
    # longer fits VMEM (~48 MiB trigger on v7x, ~100 MiB on v5e/v6e).
    return out[:, 0]


if __name__ == "__main__":
    keys = jax.random.split(jax.random.PRNGKey(0), 6)

    # --- Small shapes consistent with the module: batch=2, hidden=32, num_classes=8.
    B, H, C = 2, 32, 8
    x = jax.random.normal(keys[0], (B, H), dtype=jnp.float32)
    weight = jax.random.normal(keys[1], (C, H), dtype=jnp.float32) * 0.05   # torch [out, in]
    bias = jax.random.normal(keys[2], (C,), dtype=jnp.float32) * 0.05

    out = jax.block_until_ready(entropy_classifier_head(x, weight, bias, C))
    ref = _entropy_head_jnp(x, weight, bias, C)
    # Tolerance covers pl.reciprocal(approx=True) and the logits-form entropy vs
    # the reference's log2(p + 1e-8) epsilon variant.
    np.testing.assert_allclose(np.asarray(out), np.asarray(ref), rtol=3e-3, atol=3e-3)
    assert out.shape == (B,)

    # jnp fallback path (what tiny heads should use in production) must also match.
    out_fb = jax.block_until_ready(
        entropy_classifier_head(x, weight, bias, C, use_pallas=False))
    np.testing.assert_allclose(np.asarray(out_fb), np.asarray(ref), rtol=1e-5, atol=1e-6)

    # --- Larger, ragged-batch check: multi-tile grid, VMEM-resident weight, no x pad.
    B2, H2, C2 = 300, 256, 16
    x2 = jax.random.normal(keys[3], (B2, H2), dtype=jnp.float32)
    w2 = jax.random.normal(keys[4], (C2, H2), dtype=jnp.float32) * 0.1
    b2 = jax.random.normal(keys[5], (C2,), dtype=jnp.float32) * 0.1
    out2 = jax.block_until_ready(entropy_classifier_head(x2, w2, b2, C2))
    ref2 = _entropy_head_jnp(x2, w2, b2, C2)
    np.testing.assert_allclose(np.asarray(out2), np.asarray(ref2), rtol=3e-3, atol=3e-3)
    assert out2.shape == (B2,)

    # --- bf16-MXU-feed path (x stays f32 in HBM, cast happens in-kernel after the
    # DMA): tolerance-checked against the f32 reference per the review.
    out3 = jax.block_until_ready(
        entropy_classifier_head(x2, w2, b2, C2, tile_b=128, matmul_dtype=jnp.bfloat16))
    np.testing.assert_allclose(np.asarray(out3), np.asarray(ref2), rtol=3e-2, atol=3e-2)
    assert out3.shape == (B2,)

    # TODO(synk): the 'linear_random' sigmoid branch and the Roberta/Electra
    # classification-head branch (need_to_add_dim) are not implemented here.
    print("KERNEL_OK")
</pallas_src>

<mosaic_0001>
module attributes {stable_mosaic.version = 11 : i64} {
  func.func @_entropy_head_kernel(%arg0: i32, %arg1: memref<128x32xf32, #tpu.memory_space<vmem>>, %arg2: memref<8x32xf32, #tpu.memory_space<vmem>>, %arg3: memref<1x8xf32, #tpu.memory_space<vmem>>, %arg4: memref<128x1xf32, #tpu.memory_space<vmem>>) attributes {dimension_semantics = [#tpu.dimension_semantics<parallel>], iteration_bounds = array<i64: 1>, scalar_prefetch = 0 : i64, scratch_operands = 0 : i64, tpu.core_type = #tpu.core_type<tc>, window_params = [{transform_indices = @transform_0, window_bounds = array<i64: 128, 32>}, {pipeline_mode = #tpu.pipeline_mode<synchronous>, transform_indices = @transform_1, window_bounds = array<i64: 8, 32>}, {pipeline_mode = #tpu.pipeline_mode<synchronous>, transform_indices = @transform_2, window_bounds = array<i64: 1, 8>}, {transform_indices = @transform_3, window_bounds = array<i64: 128, 1>}]} {
    %c0 = arith.constant 0 : index
    %c0_0 = arith.constant 0 : index
    %0 = vector.load %arg1[%c0, %c0_0] : memref<128x32xf32, #tpu.memory_space<vmem>>, vector<128x32xf32>
    %c0_1 = arith.constant 0 : index
    %c0_2 = arith.constant 0 : index
    %1 = vector.load %arg2[%c0_1, %c0_2] : memref<8x32xf32, #tpu.memory_space<vmem>>, vector<8x32xf32>
    %cst = arith.constant dense<0.000000e+00> : vector<128x8xf32>
    %2 = tpu.matmul %0, %1, %cst {dimension_numbers = #tpu.dot_dimension_numbers<[1], [1], [0], [0], [0, 0, 1, 0], [], []>} : vector<128x32xf32>, vector<8x32xf32>, vector<128x8xf32> -> vector<128x8xf32>
    %c0_3 = arith.constant 0 : index
    %c0_4 = arith.constant 0 : index
    %3 = vector.load %arg3[%c0_3, %c0_4] : memref<1x8xf32, #tpu.memory_space<vmem>>, vector<1x8xf32>
    %4 = vector.broadcast %3 : vector<1x8xf32> to vector<128x8xf32>
    %5 = arith.addf %2, %4 : vector<128x8xf32>
    %cst_5 = arith.constant dense<0xFF800000> : vector<128xf32>
    %6 = vector.multi_reduction <maximumf>, %5, %cst_5 [1] : vector<128x8xf32> to vector<128xf32>
    %7 = vector.shape_cast %6 : vector<128xf32> to vector<128x1xf32>
    %8 = vector.broadcast %7 : vector<128x1xf32> to vector<128x8xf32>
    %9 = arith.subf %5, %8 : vector<128x8xf32>
    %10 = math.exp %9 : vector<128x8xf32>
    %cst_6 = arith.constant dense<0.000000e+00> : vector<128xf32>
    %11 = vector.multi_reduction <add>, %10, %cst_6 [1] : vector<128x8xf32> to vector<128xf32>
    %12 = vector.shape_cast %11 : vector<128xf32> to vector<128x1xf32>
    %13 = arith.mulf %9, %10 : vector<128x8xf32>
    %cst_7 = arith.constant dense<0.000000e+00> : vector<128xf32>
    %14 = vector.multi_reduction <add>, %13, %cst_7 [1] : vector<128x8xf32> to vector<128xf32>
    %15 = vector.shape_cast %14 : vector<128xf32> to vector<128x1xf32>
    %16 = math.log %12 : vector<128x1xf32>
    %17 = tpu.reciprocal %12 {approx = true} : vector<128x1xf32> -> vector<128x1xf32>
    %18 = arith.mulf %15, %17 : vector<128x1xf32>
    %19 = arith.subf %16, %18 : vector<128x1xf32>
    %cst_8 = arith.constant 0.48089835 : f32
    %20 = vector.broadcast %cst_8 : f32 to vector<128x1xf32>
    %21 = arith.mulf %19, %20 : vector<128x1xf32>
    %cst_9 = arith.constant 9.99999971E-10 : f32
    %cst_10 = arith.constant 1.000000e+00 : f32
    %22 = vector.broadcast %cst_9 : f32 to vector<128x1xf32>
    %23 = arith.maximumf %22, %21 : vector<128x1xf32>
    %24 = vector.broadcast %cst_10 : f32 to vector<128x1xf32>
    %25 = arith.minimumf %24, %23 : vector<128x1xf32>
    %c0_11 = arith.constant 0 : index
    %c0_12 = arith.constant 0 : index
    %26 = vector.load %arg4[%c0_11, %c0_12] : memref<128x1xf32, #tpu.memory_space<vmem>>, vector<128x1xf32>
    tpu.vector_store %arg4[%c0_11, %c0_12], %25 {strides = array<i32>} : memref<128x1xf32, #tpu.memory_space<vmem>>, vector<128x1xf32>,
    return
  }
  func.func @transform_0(%arg0: i32) -> (i32, i32) {
    %c0_i32 = arith.constant 0 : i32
    %c0_i32_0 = arith.constant 0 : i32
    return %arg0, %c0_i32 : i32, i32
  }
  func.func @transform_1(%arg0: i32) -> (i32, i32) {
    %c0_i32 = arith.constant 0 : i32
    %c0_i32_0 = arith.constant 0 : i32
    %c0_i32_1 = arith.constant 0 : i32
    return %c0_i32, %c0_i32_0 : i32, i32
  }
  func.func @transform_2(%arg0: i32) -> (i32, i32) {
    %c0_i32 = arith.constant 0 : i32
    %c0_i32_0 = arith.constant 0 : i32
    %c0_i32_1 = arith.constant 0 : i32
    return %c0_i32, %c0_i32_0 : i32, i32
  }
  func.func @transform_3(%arg0: i32) -> (i32, i32) {
    %c0_i32 = arith.constant 0 : i32
    %c0_i32_0 = arith.constant 0 : i32
    return %arg0, %c0_i32 : i32, i32
  }
}

module attributes {stable_mosaic.version = 11 : i64} {
  func.func @_entropy_head_kernel(%arg0: i32, %arg1: memref<128x32xf32, #tpu.memory_space<vmem>>, %arg2: memref<8x32xf32, #tpu.memory_space<vmem>>, %arg3: memref<1x8xf32, #tpu.memory_space<vmem>>, %arg4: memref<128x1xf32, #tpu.memory_space<vmem>>) attributes {dimension_semantics = [#tpu.dimension_semantics<parallel>], iteration_bounds = array<i64: 1>, scalar_prefetch = 0 : i64, scratch_operands = 0 : i64, tpu.core_type = #tpu.core_type<tc>, window_params = [{transform_indices = @transform_0, window_bounds = array<i64: 128, 32>}, {pipeline_mode = #tpu.pipeline_mode<synchronous>, transform_indices = @transform_1, window_bounds = array<i64: 8, 32>}, {pipeline_mode = #tpu.pipeline_mode<synchronous>, transform_indices = @transform_2, window_bounds = array<i64: 1, 8>}, {transform_indices = @transform_3, window_bounds = array<i64: 128, 1>}]} {
    %c0 = arith.constant 0 : index
    %c0_0 = arith.constant 0 : index
    %0 = vector.load %arg1[%c0, %c0_0] : memref<128x32xf32, #tpu.memory_space<vmem>>, vector<128x32xf32>
    %c0_1 = arith.constant 0 : index
    %c0_2 = arith.constant 0 : index
    %1 = vector.load %arg2[%c0_1, %c0_2] : memref<8x32xf32, #tpu.memory_space<vmem>>, vector<8x32xf32>
    %cst = arith.constant dense<0.000000e+00> : vector<128x8xf32>
    %2 = tpu.matmul %0, %1, %cst {dimension_numbers = #tpu.dot_dimension_numbers<[1], [1], [0], [0], [0, 0, 1, 0], [], []>} : vector<128x32xf32>, vector<8x32xf32>, vector<128x8xf32> -> vector<128x8xf32>
    %c0_3 = arith.constant 0 : index
    %c0_4 = arith.constant 0 : index
    %3 = vector.load %arg3[%c0_3, %c0_4] : memref<1x8xf32, #tpu.memory_space<vmem>>, vector<1x8xf32>
    %4 = vector.broadcast %3 : vector<1x8xf32> to vector<128x8xf32>
    %5 = arith.addf %2, %4 : vector<128x8xf32>
    %cst_5 = arith.constant dense<0xFF800000> : vector<128xf32>
    %6 = vector.multi_reduction <maximumf>, %5, %cst_5 [1] : vector<128x8xf32> to vector<128xf32>
    %7 = vector.shape_cast %6 : vector<128xf32> to vector<128x1xf32>
    %8 = vector.broadcast %7 : vector<128x1xf32> to vector<128x8xf32>
    %9 = arith.subf %5, %8 : vector<128x8xf32>
    %10 = math.exp %9 : vector<128x8xf32>
    %cst_6 = arith.constant dense<0.000000e+00> : vector<128xf32>
    %11 = vector.multi_reduction <add>, %10, %cst_6 [1] : vector<128x8xf32> to vector<128xf32>
    %12 = vector.shape_cast %11 : vector<128xf32> to vector<128x1xf32>
    %13 = arith.mulf %9, %10 : vector<128x8xf32>
    %cst_7 = arith.constant dense<0.000000e+00> : vector<128xf32>
    %14 = vector.multi_reduction <add>, %13, %cst_7 [1] : vector<128x8xf32> to vector<128xf32>
    %15 = vector.shape_cast %14 : vector<128xf32> to vector<128x1xf32>
    %16 = math.log %12 : vector<128x1xf32>
    %17 = tpu.reciprocal %12 {approx = true} : vector<128x1xf32> -> vector<128x1xf32>
    %18 = arith.mulf %15, %17 : vector<128x1xf32>
    %19 = arith.subf %16, %18 : vector<128x1xf32>
    %cst_8 = arith.constant 0.48089835 : f32
    %20 = vector.broadcast %cst_8 : f32 to vector<128x1xf32>
    %21 = arith.mulf %19, %20 : vector<128x1xf32>
    %cst_9 = arith.constant 9.99999971E-10 : f32
    %cst_10 = arith.constant 1.000000e+00 : f32
    %22 = vector.broadcast %cst_9 : f32 to vector<128x1xf32>
    %23 = arith.maximumf %22, %21 : vector<128x1xf32>
    %24 = vector.broadcast %cst_10 : f32 to vector<128x1xf32>
    %25 = arith.minimumf %24, %23 : vector<128x1xf32>
    %c0_11 = arith.constant 0 : index
    %c0_12 = arith.constant 0 : index
    %26 = vector.load %arg4[%c0_11, %c0_12] : memref<128x1xf32, #tpu.memory_space<vmem>>, vector<128x1xf32>
    tpu.vector_store %arg4[%c0_11, %c0_12], %25 {strides = array<i32>} : memref<128x1xf32, #tpu.memory_space<vmem>>, vector<128x1xf32>,
    return
  }
  func.func @transform_0(%arg0: i32) -> (i32, i32) {
    %c0_i32 = arith.constant 0 : i32
    %c0_i32_0 = arith.constant 0 : i32
    return %arg0, %c0_i32 : i32, i32
  }
  func.func @transform_1(%arg0: i32) -> (i32, i32) {
    %c0_i32 = arith.constant 0 : i32
    %c0_i32_0 = arith.constant 0 : i32
    %c0_i32_1 = arith.constant 0 : i32
    return %c0_i32, %c0_i32_0 : i32, i32
  }
  func.func @transform_2(%arg0: i32) -> (i32, i32) {
    %c0_i32 = arith.constant 0 : i32
    %c0_i32_0 = arith.constant 0 : i32
    %c0_i32_1 = arith.constant 0 : i32
    return %c0_i32, %c0_i32_0 : i32, i32
  }
  func.func @transform_3(%arg0: i32) -> (i32, i32) {
    %c0_i32 = arith.constant 0 : i32
    %c0_i32_0 = arith.constant 0 : i32
    return %arg0, %c0_i32 : i32, i32
  }
}

</mosaic_0001>

<bundles_post_ra>
// kernel: tpu_custom_call.1
= control target key start
LH: loop header
LB: loop body
LE: loop exit
PB: predicated region body
PF: predicated region fallthrough
CT: control target
= control target key end

     0   :  { %8 = vsyncpa [#allocation3], 0  ;;  %s1078_s0 = inlined_call_operand.hbm [shape: f32[2,32], index: 0, kind: input, shape index: {}]   ;;  %s1079_s1 = inlined_call_operand.hbm [shape: f32[8,32], index: 1, kind: input, shape index: {}]   ;;  %s1080_s2 = inlined_call_operand.vmem [shape: f32[1,8], index: 2, kind: input, shape index: {}]   ;;  %s1081_s3 = inlined_call_operand.vmem [shape: f32[2,1], index: 3, kind: output, shape index: {}]  }
   0x1   :  { %9 = vsyncpa [#allocation5], 0 }
   0x2   :  { %14 = vsyncadd [#allocation3], 2016  ;;  %s867_s12 = smov [#allocation2]   ;;  %s819_s16 = scalar_lea.hbm %s1078_s0, 32 }
   0x3   :  { %s15_s13 = sshll.u32 %s867_s12, 4  ;;  %p820_p0 = scmp.ne.s32.totalorder %s1078_s0, %s819_s16  ;;  %s16_s13 = int_to_ptr.vmem [resolvable:$true] %s15_s13 }
   0x4   :  { %p823_p1 = scmp.lt.u32.totalorder %s819_s16, %s1078_s0 }
   0x6   :  { %p825_p2 = pnand %p823_p1, %p820_p0 }
   0x8   :  { %828 = shalt.err (!%p825_p2)
}
   0x9   :  { %s829_s21 = scalar_lea.vmem %s16_s13, 32  ;;  %s833_s22 = scalar_lea.vmem %s16_s13, 2048 }
   0xa   :  { %p830_p3 = scmp.ne.s32.totalorder %s16_s13, %s829_s21  ;;  %p834_p4 = scmp.lt.s32.totalorder %s16_s13, %s16_s13 }
   0xb   :  { %p835_p5 = scmp.lt.s32.totalorder %s833_s22, %s829_s21 }
   0xd   :  { %p836_p6 = por %p835_p5, %p834_p4 }
   0xf   :  { %p837_p7 = pnand %p836_p6, %p830_p3 }
  0x11   :  { %840 = shalt.err (!%p837_p7)
}
  0x12   :  { %s868_s23 = smov 32   ;;  %s869_s24 = smov 2  }
  0x13   :  { %21 = dma.hbm_to_vmem [thread:$0]  %s1078_s0, 32, %s16_s13, [#allocation3], %s868_s23, %s868_s23, %s869_s24  }
  0x14   :  { %s870_s27 = smov [#allocation4]   ;;  %s841_s4 = scalar_lea.hbm %s1079_s1, 128 }
  0x15   :  { %s28_s28 = sshll.u32 %s870_s27, 4  ;;  %p842_p8 = scmp.ne.s32.totalorder %s1079_s1, %s841_s4  ;;  %s29_s28 = int_to_ptr.vmem [resolvable:$true] %s28_s28 }
  0x16   :  { %p845_p9 = scmp.lt.u32.totalorder %s841_s4, %s1079_s1 }
  0x18   :  { %p847_p10 = pnand %p845_p9, %p842_p8 }
  0x1a   :  { %850 = shalt.err (!%p847_p10)
}
  0x1b   :  { %s851_s9 = scalar_lea.vmem %s29_s28, 128  ;;  %p856_p12 = scmp.lt.s32.totalorder %s29_s28, %s29_s28 }
  0x1c   :  { %p852_p11 = scmp.ne.s32.totalorder %s29_s28, %s851_s9  ;;  %p857_p13 = scmp.lt.s32.totalorder %s851_s9, %s851_s9 }
  0x1e   :  { %p858_p0 = por %p857_p13, %p856_p12 }
  0x20   :  { %p859_p1 = pnand %p858_p0, %p852_p11 }
  0x22   :  { %862 = shalt.err (!%p859_p1)
}
  0x23   :  { %31 = dma.hbm_to_vmem [thread:$0]  %s1079_s1, 128, %s29_s28, [#allocation5]  }
  0x24   :  { %863 = dma.done.wait [#allocation3], 2048  }
  0x25   :  { %864 = vsyncadd [#allocation3], 4294965248 }
  0x26   :  { %865 = dma.done.wait [#allocation5], 128  }
  0x27   :  { %866 = vsyncadd [#allocation5], 4294967168  ;;  %vm64_vm0 = vcmask 261120   ;;  %v56_v0 = vld [vmem:[#allocation4] sm:$0xff]  ;;  %v41_v3 = vld [vmem:[#allocation2 + $0x8] sm:$0xff]  ;;  %vm261_vm1 = vcmask 64512  }
  0x28   :  { %v40_v1 = vld [vmem:[#allocation2] sm:$0xff]  ;;  %691 = vmatprep.subr.msk.mxu0 %vm64_vm0, %v56_v0  ;;  %717 = vmatprep.subr.msk.mxu1 %vm64_vm0, %v56_v0  ;;  %v49_v4 = vld [vmem:[#allocation2 + $0x48] sm:$0xff]  ;;  %v42_v5 = vld [vmem:[#allocation2 + $0x10] sm:$0xff]  ;;  %vm598_vm2 = vcmask 7168  }
  0x29   :  { %v48_v2 = vld [vmem:[#allocation2 + $0x40] sm:$0xff]  ;;  %692 = vmatpush3.xpose.msk.msra.mxu0 %vm64_vm0, %v56_v0  ;;  %718 = vmatpush3.xpose.msk.msra.mxu1 %vm64_vm0, %v56_v0  ;;  %v50_v6 = vld [vmem:[#allocation2 + $0x50] sm:$0xff]  ;;  %v43_v7 = vld [vmem:[#allocation2 + $0x18] sm:$0xff] }
  0x2a   :  { %693 = vmatprep.mubr.msk.f32.mxu0 %vm64_vm0, %v40_v1  ;;  %705 = vmatprep.mubr.msk.f32.mxu1 %vm64_vm0, %v48_v2  ;;  %v51_v8 = vld [vmem:[#allocation2 + $0x58] sm:$0xff]  ;;  %v44_v9 = vld [vmem:[#allocation2 + $0x20] sm:$0xff]  ;;  %v45_v11 = vld [vmem:[#allocation2 + $0x28] sm:$0xff] }
  0x2b   :  { %v52_v10 = vld [vmem:[#allocation2 + $0x60] sm:$0xff]  ;;  %v53_v12 = vld [vmem:[#allocation2 + $0x68] sm:$0xff]  ;;  %v46_v13 = vld [vmem:[#allocation2 + $0x30] sm:$0xff] }
  0x2c   :  { %694 = vmatmul.mubr.msk.f32.vlgmr.msra.gmra.mrb[0].mxu0 %vm64_vm0, %v41_v3  ;;  %706 = vmatmul.mubr.msk.f32.vlgmr.msra.gmra.mrb[0].mxu1 %vm64_vm0, %v49_v4  ;;  %v54_v14 = vld [vmem:[#allocation2 + $0x70] sm:$0xff]  ;;  %v47_v15 = vld [vmem:[#allocation2 + $0x38] sm:$0xff]  ;;  %v656_v17 = vld [vmem:[%s1080_s2] ss:$0 sm:$0xff] }
  0x2d   :  { %696 = vmatprep.mubr.msk.f32.mxu0 %vm64_vm0, %v42_v5  ;;  %708 = vmatprep.mubr.msk.f32.mxu1 %vm64_vm0, %v50_v6  ;;  %v55_v16 = vld [vmem:[#allocation2 + $0x78] sm:$0xff] }
  0x30   :  { %697 = vmatmul.mubr.msk.f32.gmra.mrb[2].mxu0 %vm64_vm0, %v43_v7  ;;  %709 = vmatmul.mubr.msk.f32.gmra.mrb[2].mxu1 %vm64_vm0, %v51_v8 }
  0x31   :  { %699 = vmatprep.mubr.msk.f32.mxu0 %vm64_vm0, %v44_v9  ;;  %711 = vmatprep.mubr.msk.f32.mxu1 %vm64_vm0, %v52_v10 }
  0x34   :  { %700 = vmatmul.mubr.msk.f32.gmra.mrb[4].mxu0 %vm64_vm0, %v45_v11  ;;  %712 = vmatmul.mubr.msk.f32.gmra.mrb[4].mxu1 %vm64_vm0, %v53_v12 }
  0x35   :  { %702 = vmatprep.mubr.msk.f32.mxu0 %vm64_vm0, %v46_v13  ;;  %714 = vmatprep.mubr.msk.f32.mxu1 %vm64_vm0, %v54_v14 }
  0x38   :  { %703 = vmatmul.mubr.msk.f32.gmra.mrb[6].mxu0 %vm64_vm0, %v47_v15  ;;  %715 = vmatmul.mubr.msk.f32.gmra.mrb[6].mxu1 %vm64_vm0, %v55_v16 }
  0xff   :  { %v695_v18 = vpop.f32.mrb[0].mxu0  ;;  %v707_v19 = vpop.f32.mrb[0].mxu1 }
 0x100   :  { %v938_v20 = vadd.f32 %v695_v18, %v656_v17  ;;  %v940_v21 = vadd.f32 %v707_v19, %v656_v17  ;;  %v182_v22 = vpop.f32.mrb[1].mxu0  ;;  %v222_v23 = vpop.f32.mrb[1].mxu1 }
 0x101   :  { %v942_v24 = vadd.f32 %v656_v17, %v182_v22  ;;  %v950_v30 = vadd.f32 %v656_v17, %v222_v23 }
 0x102   :  { %v289_v25 = vsel %vm261_vm1, %v940_v21, -inf  ;;  %v265_v26 = vsel %vm261_vm1, %v938_v20, -inf }
 0x103   :  { %290 = vmax.xlane.f32.xlu1 %v289_v25  ;;  %266 = vmax.xlane.f32.xlu0 %v265_v26  ;;  %v698_v27 = vpop.f32.mrb[2].mxu0  ;;  %v710_v28 = vpop.f32.mrb[2].mxu1  ;;  %v262_v35 = vsel %vm261_vm1, %v942_v24, -inf  ;;  %v286_v41 = vsel %vm261_vm1, %v950_v30, -inf }
 0x104   :  { %v948_v29 = vadd.f32 %v698_v27, %v656_v17  ;;  %v952_v31 = vadd.f32 %v710_v28, %v656_v17  ;;  %v232_v32 = vpop.f32.mrb[3].mxu1  ;;  %v192_v33 = vpop.f32.mrb[3].mxu0 }
 0x105   :  { %v958_v38 = vadd.f32 %v656_v17, %v232_v32  ;;  %v193_v40 = vadd.f32 %v656_v17, %v192_v33 }
 0x106   :  { %v271_v34 = vsel %vm261_vm1, %v948_v29, -inf  ;;  %v295_v39 = vsel %vm261_vm1, %v952_v31, -inf }
 0x107   :  { %272 = vmax.xlane.f32.xlu1 %v271_v34  ;;  %263 = vmax.xlane.f32.xlu0 %v262_v35  ;;  %v701_v36 = vpop.f32.mrb[4].mxu0  ;;  %v713_v37 = vpop.f32.mrb[4].mxu1  ;;  %v268_v48 = vsel %vm261_vm1, %v193_v40, -inf  ;;  %v292_v49 = vsel %vm261_vm1, %v958_v38, -inf }
 0x108   :  { %v202_v42 = vpop.f32.mrb[5].mxu0  ;;  %v242_v43 = vpop.f32.mrb[5].mxu1  ;;  %v964_v46 = vadd.f32 %v701_v36, %v656_v17  ;;  %v971_v52 = vadd.f32 %v713_v37, %v656_v17 }
 0x109   :  { %v966_v47 = vadd.f32 %v656_v17, %v202_v42  ;;  %v973_v53 = vadd.f32 %v656_v17, %v242_v43 }
 0x10a   :  { %v277_v54 = vsel %vm261_vm1, %v964_v46, -inf  ;;  %v301_v58 = vsel %vm261_vm1, %v971_v52, -inf }
 0x10b   :  { %296 = vmax.xlane.f32.xlu1 %v295_v39  ;;  %287 = vmax.xlane.f32.xlu0 %v286_v41  ;;  %v704_v44 = vpop.f32.mrb[6].mxu0  ;;  %v716_v45 = vpop.f32.mrb[6].mxu1  ;;  %v274_v55 = vsel %vm261_vm1, %v966_v47, -inf  ;;  %v298_v59 = vsel %vm261_vm1, %v973_v53, -inf }
 0x10c   :  { %v212_v50 = vpop.f32.mrb[7].mxu0  ;;  %v252_v51 = vpop.f32.mrb[7].mxu1  ;;  %v979_v56 = vadd.f32 %v704_v44, %v656_v17  ;;  %v987_v60 = vadd.f32 %v716_v45, %v656_v17 }
 0x10d   :  { %v981_v57 = vadd.f32 %v656_v17, %v212_v50  ;;  %v989_v61 = vadd.f32 %v656_v17, %v252_v51 }
 0x10e   :  { %v283_v62 = vsel %vm261_vm1, %v979_v56, -inf  ;;  %v307_v0 = vsel %vm261_vm1, %v987_v60, -inf }
 0x10f   :  { %269 = vmax.xlane.f32.xlu1 %v268_v48  ;;  %293 = vmax.xlane.f32.xlu0 %v292_v49  ;;  %v280_v63 = vsel %vm261_vm1, %v981_v57, -inf  ;;  %v304_v1 = vsel %vm261_vm1, %v989_v61, -inf }
 0x113   :  { %278 = vmax.xlane.f32.xlu1 %v277_v54  ;;  %275 = vmax.xlane.f32.xlu0 %v274_v55 }
 0x117   :  { %302 = vmax.xlane.f32.xlu1 %v301_v58  ;;  %299 = vmax.xlane.f32.xlu0 %v298_v59 }
 0x11b   :  { %284 = vmax.xlane.f32.xlu1 %v283_v62  ;;  %281 = vmax.xlane.f32.xlu0 %v280_v63 }
 0x11f   :  { %308 = vmax.xlane.f32.xlu1 %v307_v0  ;;  %305 = vmax.xlane.f32.xlu0 %v304_v1 }
 0x190   :  { %v291_v2 = vpop.xlane.xlu1 %290  ;;  %v267_v3 = vpop.xlane.xlu0 %266 }
 0x191   :  { %v319_v4 = vsub.f32 %v940_v21, %v291_v2  ;;  %v311_v5 = vsub.f32 %v938_v20, %v267_v3 }
 0x193   :  { %v328_v6 = vmul.f32 1.442695, %v311_v5  ;;  %v344_v7 = vmul.f32 1.442695, %v319_v4 }
 0x194   :  { %v273_v8 = vpop.xlane.xlu1 %272  ;;  %v264_v9 = vpop.xlane.xlu0 %263 }
 0x195   :  { %v310_v10 = vsub.f32 %v942_v24, %v264_v9  ;;  %723 = vpow2.f32 %v328_v6  ;;  %v313_v16 = vsub.f32 %v948_v29, %v273_v8 }
 0x196   :  { %725 = vpow2.f32 %v344_v7 }
 0x197   :  { %v326_v11 = vmul.f32 1.442695, %v310_v10  ;;  %v332_v20 = vmul.f32 1.442695, %v313_v16 }
 0x198   :  { %v297_v12 = vpop.xlane.xlu1 %296  ;;  %v288_v13 = vpop.xlane.xlu0 %287 }
 0x199   :  { %v318_v14 = vsub.f32 %v950_v30, %v288_v13  ;;  %727 = vpow2.f32 %v326_v11  ;;  %v1005_v18 = vsub.f32 %v952_v31, %v297_v12 }
 0x19b   :  { %v342_v15 = vmul.f32 1.442695, %v318_v14  ;;  %v348_v25 = vmul.f32 1.442695, %v1005_v18 }
 0x19c   :  { %v270_v17 = vpop.xlane.xlu1 %269  ;;  %v294_v22 = vpop.xlane.xlu0 %293 }
 0x19d   :  { %729 = vpow2.f32 %v342_v15  ;;  %v1007_v21 = vsub.f32 %v193_v40, %v270_v17  ;;  %v1013_v28 = vsub.f32 %v958_v38, %v294_v22 }
 0x19e   :  { %731 = vpow2.f32 %v332_v20 }
 0x19f   :  { %v724_v19 = vpop.eup %723  ;;  %v330_v27 = vmul.f32 1.442695, %v1007_v21  ;;  %733 = vpow2.f32 %v348_v25  ;;  %v346_v34 = vmul.f32 1.442695, %v1013_v28 }
 0x1a0   :  { %v361_v23 = vsel %vm261_vm1, %v724_v19, 0.0  ;;  %v726_v24 = vpop.eup %725  ;;  %v407_v31 = vmul.f32 %v724_v19, %v311_v5  ;;  %v279_v32 = vpop.xlane.xlu1 %278 }
 0x1a1   :  { %362 = vadd.xlane.f32.xlu1 %v361_v23  ;;  %v385_v29 = vsel %vm261_vm1, %v726_v24, 0.0  ;;  %735 = vpow2.f32 %v330_v27  ;;  %v415_v37 = vmul.f32 %v726_v24, %v319_v4  ;;  %v276_v39 = vpop.xlane.xlu0 %275  ;;  %v1021_v40 = vsub.f32 %v964_v46, %v279_v32 }
 0x1a2   :  { %v425_v35 = vsel %vm261_vm1, %v407_v31, 0.0  ;;  %737 = vpow2.f32 %v346_v34  ;;  %v1026_v48 = vsub.f32 %v966_v47, %v276_v39 }
 0x1a3   :  { %v728_v26 = vpop.eup %727  ;;  %v449_v42 = vsel %vm261_vm1, %v415_v37, 0.0  ;;  %v336_v49 = vmul.f32 1.442695, %v1021_v40 }
 0x1a4   :  { %v358_v30 = vsel %vm261_vm1, %v728_v26, 0.0  ;;  %v406_v38 = vmul.f32 %v728_v26, %v310_v10  ;;  %v303_v41 = vpop.xlane.xlu1 %302  ;;  %v334_v59 = vmul.f32 1.442695, %v1026_v48 }
 0x1a5   :  { %386 = vadd.xlane.f32.xlu1 %v385_v29  ;;  %359 = vadd.xlane.f32.xlu0 %v358_v30  ;;  %v1030_v50 = vsub.f32 %v971_v52, %v303_v41  ;;  %v300_v46 = vpop.xlane.xlu0 %299  ;;  %739 = vpow2.f32 %v336_v49 }
 0x1a6   :  { %v422_v43 = vsel %vm261_vm1, %v406_v38, 0.0  ;;  %v1037_v63 = vsub.f32 %v973_v53, %v300_v46  ;;  %741 = vpow2.f32 %v334_v59 }
 0x1a7   :  { %v730_v33 = vpop.eup %729  ;;  %v352_v47 = vmul.f32 1.442695, %v1030_v50 }
 0x1a8   :  { %v382_v36 = vsel %vm261_vm1, %v730_v33, 0.0  ;;  %v414_v44 = vmul.f32 %v730_v33, %v318_v14  ;;  %v732_v45 = vpop.eup %731  ;;  %v285_v62 = vpop.xlane.xlu1 %284  ;;  %v350_v4 = vmul.f32 1.442695, %v1037_v63 }
 0x1a9   :  { %426 = vadd.xlane.f32.xlu1 %v425_v35  ;;  %383 = vadd.xlane.f32.xlu0 %v382_v36  ;;  %v734_v51 = vpop.eup %733  ;;  %v367_v54 = vsel %vm261_vm1, %v732_v45, 0.0  ;;  %v409_v1 = vmul.f32 %v732_v45, %v313_v16  ;;  %v282_v3 = vpop.xlane.xlu0 %281  ;;  %743 = vpow2.f32 %v352_v47  ;;  %v317_v5 = vsub.f32 %v979_v56, %v285_v62 }
 0x1aa   :  { %v446_v55 = vsel %vm261_vm1, %v414_v44, 0.0  ;;  %v391_v52 = vsel %vm261_vm1, %v734_v51, 0.0  ;;  %v417_v8 = vmul.f32 %v734_v51, %v1005_v18  ;;  %v316_v10 = vsub.f32 %v981_v57, %v282_v3 }
 0x1ab   :  { %v736_v58 = vpop.eup %735  ;;  %v431_v7 = vsel %vm261_vm1, %v409_v1, 0.0  ;;  %745 = vpow2.f32 %v350_v4  ;;  %v340_v11 = vmul.f32 1.442695, %v317_v5 }
 0x1ac   :  { %v364_v0 = vsel %vm261_vm1, %v736_v58, 0.0  ;;  %v738_v2 = vpop.eup %737  ;;  %v309_v6 = vpop.xlane.xlu1 %308  ;;  %v408_v9 = vmul.f32 %v736_v58, %v1007_v21  ;;  %v455_v56 = vsel %vm261_vm1, %v417_v8, 0.0  ;;  %v338_v17 = vmul.f32 1.442695, %v316_v10 }
 0x1ad   :  { %450 = vadd.xlane.f32.xlu1 %v449_v42  ;;  %423 = vadd.xlane.f32.xlu0 %v422_v43  ;;  %v388_v53 = vsel %vm261_vm1, %v738_v2, 0.0  ;;  %v325_v12 = vsub.f32 %v987_v60, %v309_v6  ;;  %v306_v13 = vpop.xlane.xlu0 %305  ;;  %v416_v15 = vmul.f32 %v738_v2, %v1013_v28  ;;  %747 = vpow2.f32 %v340_v11 }
 0x1ae   :  { %v428_v14 = vsel %vm261_vm1, %v408_v9, 0.0  ;;  %v324_v19 = vsub.f32 %v989_v61, %v306_v13  ;;  %749 = vpow2.f32 %v338_v17 }
 0x1af   :  { %v740_v16 = vpop.eup %739  ;;  %v356_v18 = vmul.f32 1.442695, %v325_v12  ;;  %v452_v60 = vsel %vm261_vm1, %v416_v15, 0.0 }
 0x1b0   :  { %v742_v57 = vpop.eup %741  ;;  %v373_v20 = vsel %vm261_vm1, %v740_v16, 0.0  ;;  %v354_v22 = vmul.f32 1.442695, %v324_v19  ;;  %v411_v25 = vmul.f32 %v740_v16, %v1021_v40 }
 0x1b1   :  { %368 = vadd.xlane.f32.xlu1 %v367_v54  ;;  %447 = vadd.xlane.f32.xlu0 %v446_v55  ;;  %751 = vpow2.f32 %v356_v18  ;;  %v370_v24 = vsel %vm261_vm1, %v742_v57, 0.0  ;;  %v410_v28 = vmul.f32 %v742_v57, %v1026_v48 }
 0x1b2   :  { %753 = vpow2.f32 %v354_v22  ;;  %v437_v61 = vsel %vm261_vm1, %v411_v25, 0.0 }
 0x1b3   :  { %v744_v21 = vpop.eup %743  ;;  %v434_v32 = vsel %vm261_vm1, %v410_v28, 0.0 }
 0x1b4   :  { %v397_v23 = vsel %vm261_vm1, %v744_v21, 0.0  ;;  %v419_v36 = vmul.f32 %v744_v21, %v1030_v50 }
 0x1b5   :  { %392 = vadd.xlane.f32.xlu1 %v391_v52  ;;  %365 = vadd.xlane.f32.xlu0 %v364_v0  ;;  %v746_v26 = vpop.eup %745 }
 0x1b6   :  { %v394_v27 = vsel %vm261_vm1, %v746_v26, 0.0  ;;  %v461_v38 = vsel %vm261_vm1, %v419_v36, 0.0  ;;  %v418_v41 = vmul.f32 %v746_v26, %v1037_v63 }
 0x1b7   :  { %v748_v29 = vpop.eup %747 }
 0x1b8   :  { %v750_v30 = vpop.eup %749  ;;  %v379_v31 = vsel %vm261_vm1, %v748_v29, 0.0  ;;  %v413_v40 = vmul.f32 %v748_v29, %v317_v5  ;;  %v458_v43 = vsel %vm261_vm1, %v418_v41, 0.0 }
 0x1b9   :  { %432 = vadd.xlane.f32.xlu1 %v431_v7  ;;  %389 = vadd.xlane.f32.xlu0 %v388_v53  ;;  %v376_v35 = vsel %vm261_vm1, %v750_v30, 0.0  ;;  %v412_v45 = vmul.f32 %v750_v30, %v316_v10 }
 0x1ba   :  { %v443_v42 = vsel %vm261_vm1, %v413_v40, 0.0 }
 0x1bb   :  { %v752_v33 = vpop.eup %751  ;;  %v440_v49 = vsel %vm261_vm1, %v412_v45, 0.0 }
 0x1bc   :  { %v403_v34 = vsel %vm261_vm1, %v752_v33, 0.0  ;;  %v754_v37 = vpop.eup %753  ;;  %v421_v44 = vmul.f32 %v752_v33, %v325_v12 }
 0x1bd   :  { %456 = vadd.xlane.f32.xlu1 %v455_v56  ;;  %429 = vadd.xlane.f32.xlu0 %v428_v14  ;;  %v400_v39 = vsel %vm261_vm1, %v754_v37, 0.0  ;;  %v420_v50 = vmul.f32 %v754_v37, %v324_v19 }
 0x1be   :  { %v467_v48 = vsel %vm261_vm1, %v421_v44, 0.0 }
 0x1bf   :  { %v464_v51 = vsel %vm261_vm1, %v420_v50, 0.0 }
 0x1c1   :  { %374 = vadd.xlane.f32.xlu1 %v373_v20  ;;  %453 = vadd.xlane.f32.xlu0 %v452_v60 }
 0x1c5   :  { %398 = vadd.xlane.f32.xlu1 %v397_v23  ;;  %371 = vadd.xlane.f32.xlu0 %v370_v24 }
 0x1c9   :  { %438 = vadd.xlane.f32.xlu1 %v437_v61  ;;  %395 = vadd.xlane.f32.xlu0 %v394_v27 }
 0x1cd   :  { %380 = vadd.xlane.f32.xlu1 %v379_v31  ;;  %435 = vadd.xlane.f32.xlu0 %v434_v32 }
 0x1d1   :  { %404 = vadd.xlane.f32.xlu1 %v403_v34  ;;  %377 = vadd.xlane.f32.xlu0 %v376_v35 }
 0x1d5   :  { %462 = vadd.xlane.f32.xlu1 %v461_v38  ;;  %401 = vadd.xlane.f32.xlu0 %v400_v39 }
 0x1d9   :  { %444 = vadd.xlane.f32.xlu1 %v443_v42  ;;  %459 = vadd.xlane.f32.xlu0 %v458_v43 }
 0x1dd   :  { %468 = vadd.xlane.f32.xlu1 %v467_v48  ;;  %441 = vadd.xlane.f32.xlu0 %v440_v49 }
 0x1e1   :  { %465 = vadd.xlane.f32.xlu0 %v464_v51 }
 0x22e   :  { %v363_v46 = vpop.xlane.xlu1 %362 }
 0x22f   :  { %755 = vlog2.f32 %v363_v46 }
 0x230   :  { %757 = vrcp.f32 %v363_v46 }
 0x232   :  { %v387_v54 = vpop.xlane.xlu1 %386  ;;  %v360_v55 = vpop.xlane.xlu0 %359 }
 0x233   :  { %759 = vlog2.f32 %v387_v54 }
 0x234   :  { %761 = vrcp.f32 %v387_v54 }
 0x235   :  { %763 = vlog2.f32 %v360_v55 }
 0x236   :  { %765 = vrcp.f32 %v360_v55  ;;  %v427_v58 = vpop.xlane.xlu1 %426  ;;  %v384_v59 = vpop.xlane.xlu0 %383 }
 0x237   :  { %767 = vlog2.f32 %v384_v59 }
 0x238   :  { %769 = vrcp.f32 %v384_v59 }
 0x239   :  { %v756_v62 = vpop.eup %755 }
 0x23a   :  { %v758_v47 = vpop.eup %757  ;;  %v451_v63 = vpop.xlane.xlu1 %450 }
 0x23b   :  { %v424_v52 = vpop.xlane.xlu0 %423 }
 0x23d   :  { %v760_v0 = vpop.eup %759 }
 0x23e   :  { %v762_v1 = vpop.eup %761  ;;  %v369_v2 = vpop.xlane.xlu1 %368 }
 0x23f   :  { %v448_v3 = vpop.xlane.xlu0 %447  ;;  %v764_v4 = vpop.eup %763  ;;  %771 = vlog2.f32 %v369_v2 }
 0x240   :  { %v766_v5 = vpop.eup %765  ;;  %v471_v6 = vmul.f32 0.6931472, %v764_v4  ;;  %773 = vrcp.f32 %v369_v2 }
 0x241   :  { %v768_v7 = vpop.eup %767  ;;  %v518_v53 = vmul.f32 %v766_v5, %v424_v52 }
 0x242   :  { %v770_v8 = vpop.eup %769  ;;  %v393_v9 = vpop.xlane.xlu1 %392 }
 0x243   :  { %v366_v10 = vpop.xlane.xlu0 %365  ;;  %v534_v11 = vsub.f32 %v471_v6, %v518_v53  ;;  %775 = vlog2.f32 %v393_v9 }
 0x244   :  { %777 = vrcp.f32 %v393_v9 }
 0x245   :  { %v550_v12 = vmul.f32 0.48089835, %v534_v11  ;;  %779 = vlog2.f32 %v366_v10 }
 0x246   :  { %v433_v13 = vpop.xlane.xlu1 %432  ;;  %781 = vrcp.f32 %v366_v10 }
 0x247   :  { %v390_v56 = vpop.xlane.xlu0 %389  ;;  %v566_v14 = vmax.f32 %v550_v12, 1e-09 }
 0x248   :  { %783 = vlog2.f32 %v390_v56 }
 0x249   :  { %v772_v15 = vpop.eup %771  ;;  %v582_v16 = vmin.f32 %v566_v14, 1.0  ;;  %785 = vrcp.f32 %v390_v56 }
 0x24a   :  { %v774_v17 = vpop.eup %773  ;;  %v457_v18 = vpop.xlane.xlu1 %456 }
 0x24b   :  { %v430_v19 = vpop.xlane.xlu0 %429  ;;  %599 = vst.msk [vmem:[#allocation6] sm:$0xff] %vm598_vm2, %v582_v16 }
 0x24d   :  { %v776_v57 = vpop.eup %775 }
 0x24e   :  { %v375_v20 = vpop.xlane.xlu1 %374  ;;  %v778_v21 = vpop.eup %777 }
 0x24f   :  { %v454_v60 = vpop.xlane.xlu0 %453  ;;  %787 = vlog2.f32 %v375_v20  ;;  %v780_v22 = vpop.eup %779 }
 0x250   :  { %789 = vrcp.f32 %v375_v20  ;;  %v782_v23 = vpop.eup %781 }
 0x252   :  { %v784_v24 = vpop.eup %783  ;;  %v632_v25 = vld [vmem:[#allocation6] sm:$0x3]  ;;  %v399_v26 = vpop.xlane.xlu1 %398 }
 0x253   :  { %v372_v61 = vpop.xlane.xlu0 %371  ;;  %v786_v27 = vpop.eup %785  ;;  %633 = vst [vmem:[%s1081_s3] sm:$0x3] %v632_v25  ;;  %791 = vlog2.f32 %v399_v26 }
 0x254   :  { %793 = vlog2.f32 %v372_v61 }
 0x255   :  { %795 = vrcp.f32 %v372_v61 }
 0x256   :  { %v439_v28 = vpop.xlane.xlu1 %438  ;;  %797 = vrcp.f32 %v399_v26 }
 0x257   :  { %v396_v29 = vpop.xlane.xlu0 %395 }
 0x258   :  { %799 = vlog2.f32 %v396_v29 }
 0x259   :  { %v788_v30 = vpop.eup %787  ;;  %801 = vrcp.f32 %v396_v29 }
 0x25a   :  { %v790_v31 = vpop.eup %789  ;;  %v381_v32 = vpop.xlane.xlu1 %380 }
 0x25b   :  { %v436_v33 = vpop.xlane.xlu0 %435  ;;  %803 = vlog2.f32 %v381_v32 }
 0x25c   :  { %805 = vrcp.f32 %v381_v32 }
 0x25d   :  { %v792_v34 = vpop.eup %791 }
 0x25e   :  { %v405_v35 = vpop.xlane.xlu1 %404  ;;  %v794_v37 = vpop.eup %793 }
 0x25f   :  { %v378_v36 = vpop.xlane.xlu0 %377  ;;  %807 = vlog2.f32 %v405_v35  ;;  %v796_v38 = vpop.eup %795 }
 0x260   :  { %809 = vrcp.f32 %v405_v35  ;;  %v798_v39 = vpop.eup %797 }
 0x261   :  { %811 = vlog2.f32 %v378_v36 }
 0x262   :  { %813 = vrcp.f32 %v378_v36  ;;  %v463_v40 = vpop.xlane.xlu1 %462  ;;  %v800_v42 = vpop.eup %799 }
 0x263   :  { %v402_v41 = vpop.xlane.xlu0 %401  ;;  %v802_v43 = vpop.eup %801 }
 0x264   :  { %815 = vlog2.f32 %v402_v41 }
 0x265   :  { %817 = vrcp.f32 %v402_v41  ;;  %v804_v44 = vpop.eup %803 }
 0x266   :  { %v806_v45 = vpop.eup %805  ;;  %v445_v48 = vpop.xlane.xlu1 %444 }
 0x267   :  { %v460_v49 = vpop.xlane.xlu0 %459 }
 0x269   :  { %v808_v50 = vpop.eup %807 }
 0x26a   :  { %v810_v51 = vpop.eup %809  ;;  %v469_v46 = vpop.xlane.xlu1 %468 }
 0x26b   :  { %v442_v54 = vpop.xlane.xlu0 %441  ;;  %v812_v55 = vpop.eup %811 }
 0x26c   :  { %v814_v58 = vpop.eup %813 }
 0x26e   :  { %v816_v59 = vpop.eup %815 }
 0x26f   :  { %v818_v62 = vpop.eup %817  ;;  %v466_v47 = vpop.xlane.xlu0 %465 }
 0x270   :  { %650 = vsyncpa [#allocation3], 1 }
 0x271   :  { %651 = vsyncpa [#allocation5], 1 }

// kernel: tpu_custom_call.1
= control target key start
LH: loop header
LB: loop body
LE: loop exit
PB: predicated region body
PF: predicated region fallthrough
CT: control target
= control target key end

     0   :  { %8 = vsyncpa [#allocation3], 0  ;;  %s1078_s0 = inlined_call_operand.hbm [shape: f32[2,32], index: 0, kind: input, shape index: {}]   ;;  %s1079_s1 = inlined_call_operand.hbm [shape: f32[8,32], index: 1, kind: input, shape index: {}]   ;;  %s1080_s2 = inlined_call_operand.vmem [shape: f32[1,8], index: 2, kind: input, shape index: {}]   ;;  %s1081_s3 = inlined_call_operand.vmem [shape: f32[2,1], index: 3, kind: output, shape index: {}]  }
   0x1   :  { %9 = vsyncpa [#allocation5], 0 }
   0x2   :  { %14 = vsyncadd [#allocation3], 2016  ;;  %s867_s12 = smov [#allocation2]   ;;  %s819_s16 = scalar_lea.hbm %s1078_s0, 32 }
   0x3   :  { %s15_s13 = sshll.u32 %s867_s12, 4  ;;  %p820_p0 = scmp.ne.s32.totalorder %s1078_s0, %s819_s16  ;;  %s16_s13 = int_to_ptr.vmem [resolvable:$true] %s15_s13 }
   0x4   :  { %p823_p1 = scmp.lt.u32.totalorder %s819_s16, %s1078_s0 }
   0x6   :  { %p825_p2 = pnand %p823_p1, %p820_p0 }
   0x8   :  { %828 = shalt.err (!%p825_p2)
}
   0x9   :  { %s829_s21 = scalar_lea.vmem %s16_s13, 32  ;;  %s833_s22 = scalar_lea.vmem %s16_s13, 2048 }
   0xa   :  { %p830_p3 = scmp.ne.s32.totalorder %s16_s13, %s829_s21  ;;  %p834_p4 = scmp.lt.s32.totalorder %s16_s13, %s16_s13 }
   0xb   :  { %p835_p5 = scmp.lt.s32.totalorder %s833_s22, %s829_s21 }
   0xd   :  { %p836_p6 = por %p835_p5, %p834_p4 }
   0xf   :  { %p837_p7 = pnand %p836_p6, %p830_p3 }
  0x11   :  { %840 = shalt.err (!%p837_p7)
}
  0x12   :  { %s868_s23 = smov 32   ;;  %s869_s24 = smov 2  }
  0x13   :  { %21 = dma.hbm_to_vmem [thread:$0]  %s1078_s0, 32, %s16_s13, [#allocation3], %s868_s23, %s868_s23, %s869_s24  }
  0x14   :  { %s870_s27 = smov [#allocation4]   ;;  %s841_s4 = scalar_lea.hbm %s1079_s1, 128 }
  0x15   :  { %s28_s28 = sshll.u32 %s870_s27, 4  ;;  %p842_p8 = scmp.ne.s32.totalorder %s1079_s1, %s841_s4  ;;  %s29_s28 = int_to_ptr.vmem [resolvable:$true] %s28_s28 }
  0x16   :  { %p845_p9 = scmp.lt.u32.totalorder %s841_s4, %s1079_s1 }
  0x18   :  { %p847_p10 = pnand %p845_p9, %p842_p8 }
  0x1a   :  { %850 = shalt.err (!%p847_p10)
}
  0x1b   :  { %s851_s9 = scalar_lea.vmem %s29_s28, 128  ;;  %p856_p12 = scmp.lt.s32.totalorder %s29_s28, %s29_s28 }
  0x1c   :  { %p852_p11 = scmp.ne.s32.totalorder %s29_s28, %s851_s9  ;;  %p857_p13 = scmp.lt.s32.totalorder %s851_s9, %s851_s9 }
  0x1e   :  { %p858_p0 = por %p857_p13, %p856_p12 }
  0x20   :  { %p859_p1 = pnand %p858_p0, %p852_p11 }
  0x22   :  { %862 = shalt.err (!%p859_p1)
}
  0x23   :  { %31 = dma.hbm_to_vmem [thread:$0]  %s1079_s1, 128, %s29_s28, [#allocation5]  }
  0x24   :  { %863 = dma.done.wait [#allocation3], 2048  }
  0x25   :  { %864 = vsyncadd [#allocation3], 4294965248 }
  0x26   :  { %865 = dma.done.wait [#allocation5], 128  }
  0x27   :  { %866 = vsyncadd [#allocation5], 4294967168  ;;  %vm64_vm0 = vcmask 261120   ;;  %v56_v0 = vld [vmem:[#allocation4] sm:$0xff]  ;;  %v41_v3 = vld [vmem:[#allocation2 + $0x8] sm:$0xff]  ;;  %vm261_vm1 = vcmask 64512  }
  0x28   :  { %v40_v1 = vld [vmem:[#allocation2] sm:$0xff]  ;;  %691 = vmatprep.subr.msk.mxu0 %vm64_vm0, %v56_v0  ;;  %717 = vmatprep.subr.msk.mxu1 %vm64_vm0, %v56_v0  ;;  %v49_v4 = vld [vmem:[#allocation2 + $0x48] sm:$0xff]  ;;  %v42_v5 = vld [vmem:[#allocation2 + $0x10] sm:$0xff]  ;;  %vm598_vm2 = vcmask 7168  }
  0x29   :  { %v48_v2 = vld [vmem:[#allocation2 + $0x40] sm:$0xff]  ;;  %692 = vmatpush3.xpose.msk.msra.mxu0 %vm64_vm0, %v56_v0  ;;  %718 = vmatpush3.xpose.msk.msra.mxu1 %vm64_vm0, %v56_v0  ;;  %v50_v6 = vld [vmem:[#allocation2 + $0x50] sm:$0xff]  ;;  %v43_v7 = vld [vmem:[#allocation2 + $0x18] sm:$0xff] }
  0x2a   :  { %693 = vmatprep.mubr.msk.f32.mxu0 %vm64_vm0, %v40_v1  ;;  %705 = vmatprep.mubr.msk.f32.mxu1 %vm64_vm0, %v48_v2  ;;  %v51_v8 = vld [vmem:[#allocation2 + $0x58] sm:$0xff]  ;;  %v44_v9 = vld [vmem:[#allocation2 + $0x20] sm:$0xff]  ;;  %v45_v11 = vld [vmem:[#allocation2 + $0x28] sm:$0xff] }
  0x2b   :  { %v52_v10 = vld [vmem:[#allocation2 + $0x60] sm:$0xff]  ;;  %v53_v12 = vld [vmem:[#allocation2 + $0x68] sm:$0xff]  ;;  %v46_v13 = vld [vmem:[#allocation2 + $0x30] sm:$0xff] }
  0x2c   :  { %694 = vmatmul.mubr.msk.f32.vlgmr.msra.gmra.mrb[0].mxu0 %vm64_vm0, %v41_v3  ;;  %706 = vmatmul.mubr.msk.f32.vlgmr.msra.gmra.mrb[0].mxu1 %vm64_vm0, %v49_v4  ;;  %v54_v14 = vld [vmem:[#allocation2 + $0x70] sm:$0xff]  ;;  %v47_v15 = vld [vmem:[#allocation2 + $0x38] sm:$0xff]  ;;  %v656_v17 = vld [vmem:[%s1080_s2] ss:$0 sm:$0xff] }
  0x2d   :  { %696 = vmatprep.mubr.msk.f32.mxu0 %vm64_vm0, %v42_v5  ;;  %708 = vmatprep.mubr.msk.f32.mxu1 %vm64_vm0, %v50_v6  ;;  %v55_v16 = vld [vmem:[#allocation2 + $0x78] sm:$0xff] }
  0x30   :  { %697 = vmatmul.mubr.msk.f32.gmra.mrb[2].mxu0 %vm64_vm0, %v43_v7  ;;  %709 = vmatmul.mubr.msk.f32.gmra.mrb[2].mxu1 %vm64_vm0, %v51_v8 }
  0x31   :  { %699 = vmatprep.mubr.msk.f32.mxu0 %vm64_vm0, %v44_v9  ;;  %711 = vmatprep.mubr.msk.f32.mxu1 %vm64_vm0, %v52_v10 }
  0x34   :  { %700 = vmatmul.mubr.msk.f32.gmra.mrb[4].mxu0 %vm64_vm0, %v45_v11  ;;  %712 = vmatmul.mubr.msk.f32.gmra.mrb[4].mxu1 %vm64_vm0, %v53_v12 }
  0x35   :  { %702 = vmatprep.mubr.msk.f32.mxu0 %vm64_vm0, %v46_v13  ;;  %714 = vmatprep.mubr.msk.f32.mxu1 %vm64_vm0, %v54_v14 }
  0x38   :  { %703 = vmatmul.mubr.msk.f32.gmra.mrb[6].mxu0 %vm64_vm0, %v47_v15  ;;  %715 = vmatmul.mubr.msk.f32.gmra.mrb[6].mxu1 %vm64_vm0, %v55_v16 }
  0xff   :  { %v695_v18 = vpop.f32.mrb[0].mxu0  ;;  %v707_v19 = vpop.f32.mrb[0].mxu1 }
 0x100   :  { %v938_v20 = vadd.f32 %v695_v18, %v656_v17  ;;  %v940_v21 = vadd.f32 %v707_v19, %v656_v17  ;;  %v182_v22 = vpop.f32.mrb[1].mxu0  ;;  %v222_v23 = vpop.f32.mrb[1].mxu1 }
 0x101   :  { %v942_v24 = vadd.f32 %v656_v17, %v182_v22  ;;  %v950_v30 = vadd.f32 %v656_v17, %v222_v23 }
 0x102   :  { %v289_v25 = vsel %vm261_vm1, %v940_v21, -inf  ;;  %v265_v26 = vsel %vm261_vm1, %v938_v20, -inf }
 0x103   :  { %290 = vmax.xlane.f32.xlu1 %v289_v25  ;;  %266 = vmax.xlane.f32.xlu0 %v265_v26  ;;  %v698_v27 = vpop.f32.mrb[2].mxu0  ;;  %v710_v28 = vpop.f32.mrb[2].mxu1  ;;  %v262_v35 = vsel %vm261_vm1, %v942_v24, -inf  ;;  %v286_v41 = vsel %vm261_vm1, %v950_v30, -inf }
 0x104   :  { %v948_v29 = vadd.f32 %v698_v27, %v656_v17  ;;  %v952_v31 = vadd.f32 %v710_v28, %v656_v17  ;;  %v232_v32 = vpop.f32.mrb[3].mxu1  ;;  %v192_v33 = vpop.f32.mrb[3].mxu0 }
 0x105   :  { %v958_v38 = vadd.f32 %v656_v17, %v232_v32  ;;  %v193_v40 = vadd.f32 %v656_v17, %v192_v33 }
 0x106   :  { %v271_v34 = vsel %vm261_vm1, %v948_v29, -inf  ;;  %v295_v39 = vsel %vm261_vm1, %v952_v31, -inf }
 0x107   :  { %272 = vmax.xlane.f32.xlu1 %v271_v34  ;;  %263 = vmax.xlane.f32.xlu0 %v262_v35  ;;  %v701_v36 = vpop.f32.mrb[4].mxu0  ;;  %v713_v37 = vpop.f32.mrb[4].mxu1  ;;  %v268_v48 = vsel %vm261_vm1, %v193_v40, -inf  ;;  %v292_v49 = vsel %vm261_vm1, %v958_v38, -inf }
 0x108   :  { %v202_v42 = vpop.f32.mrb[5].mxu0  ;;  %v242_v43 = vpop.f32.mrb[5].mxu1  ;;  %v964_v46 = vadd.f32 %v701_v36, %v656_v17  ;;  %v971_v52 = vadd.f32 %v713_v37, %v656_v17 }
 0x109   :  { %v966_v47 = vadd.f32 %v656_v17, %v202_v42  ;;  %v973_v53 = vadd.f32 %v656_v17, %v242_v43 }
 0x10a   :  { %v277_v54 = vsel %vm261_vm1, %v964_v46, -inf  ;;  %v301_v58 = vsel %vm261_vm1, %v971_v52, -inf }
 0x10b   :  { %296 = vmax.xlane.f32.xlu1 %v295_v39  ;;  %287 = vmax.xlane.f32.xlu0 %v286_v41  ;;  %v704_v44 = vpop.f32.mrb[6].mxu0  ;;  %v716_v45 = vpop.f32.mrb[6].mxu1  ;;  %v274_v55 = vsel %vm261_vm1, %v966_v47, -inf  ;;  %v298_v59 = vsel %vm261_vm1, %v973_v53, -inf }
 0x10c   :  { %v212_v50 = vpop.f32.mrb[7].mxu0  ;;  %v252_v51 = vpop.f32.mrb[7].mxu1  ;;  %v979_v56 = vadd.f32 %v704_v44, %v656_v17  ;;  %v987_v60 = vadd.f32 %v716_v45, %v656_v17 }
 0x10d   :  { %v981_v57 = vadd.f32 %v656_v17, %v212_v50  ;;  %v989_v61 = vadd.f32 %v656_v17, %v252_v51 }
 0x10e   :  { %v283_v62 = vsel %vm261_vm1, %v979_v56, -inf  ;;  %v307_v0 = vsel %vm261_vm1, %v987_v60, -inf }
 0x10f   :  { %269 = vmax.xlane.f32.xlu1 %v268_v48  ;;  %293 = vmax.xlane.f32.xlu0 %v292_v49  ;;  %v280_v63 = vsel %vm261_vm1, %v981_v57, -inf  ;;  %v304_v1 = vsel %vm261_vm1, %v989_v61, -inf }
 0x113   :  { %278 = vmax.xlane.f32.xlu1 %v277_v54  ;;  %275 = vmax.xlane.f32.xlu0 %v274_v55 }
 0x117   :  { %302 = vmax.xlane.f32.xlu1 %v301_v58  ;;  %299 = vmax.xlane.f32.xlu0 %v298_v59 }
 0x11b   :  { %284 = vmax.xlane.f32.xlu1 %v283_v62  ;;  %281 = vmax.xlane.f32.xlu0 %v280_v63 }
 0x11f   :  { %308 = vmax.xlane.f32.xlu1 %v307_v0  ;;  %305 = vmax.xlane.f32.xlu0 %v304_v1 }
 0x190   :  { %v291_v2 = vpop.xlane.xlu1 %290  ;;  %v267_v3 = vpop.xlane.xlu0 %266 }
 0x191   :  { %v319_v4 = vsub.f32 %v940_v21, %v291_v2  ;;  %v311_v5 = vsub.f32 %v938_v20, %v267_v3 }
 0x193   :  { %v328_v6 = vmul.f32 1.442695, %v311_v5  ;;  %v344_v7 = vmul.f32 1.442695, %v319_v4 }
 0x194   :  { %v273_v8 = vpop.xlane.xlu1 %272  ;;  %v264_v9 = vpop.xlane.xlu0 %263 }
 0x195   :  { %v310_v10 = vsub.f32 %v942_v24, %v264_v9  ;;  %723 = vpow2.f32 %v328_v6  ;;  %v313_v16 = vsub.f32 %v948_v29, %v273_v8 }
 0x196   :  { %725 = vpow2.f32 %v344_v7 }
 0x197   :  { %v326_v11 = vmul.f32 1.442695, %v310_v10  ;;  %v332_v20 = vmul.f32 1.442695, %v313_v16 }
 0x198   :  { %v297_v12 = vpop.xlane.xlu1 %296  ;;  %v288_v13 = vpop.xlane.xlu0 %287 }
 0x199   :  { %v318_v14 = vsub.f32 %v950_v30, %v288_v13  ;;  %727 = vpow2.f32 %v326_v11  ;;  %v1005_v18 = vsub.f32 %v952_v31, %v297_v12 }
 0x19b   :  { %v342_v15 = vmul.f32 1.442695, %v318_v14  ;;  %v348_v25 = vmul.f32 1.442695, %v1005_v18 }
 0x19c   :  { %v270_v17 = vpop.xlane.xlu1 %269  ;;  %v294_v22 = vpop.xlane.xlu0 %293 }
 0x19d   :  { %729 = vpow2.f32 %v342_v15  ;;  %v1007_v21 = vsub.f32 %v193_v40, %v270_v17  ;;  %v1013_v28 = vsub.f32 %v958_v38, %v294_v22 }
 0x19e   :  { %731 = vpow2.f32 %v332_v20 }
 0x19f   :  { %v724_v19 = vpop.eup %723  ;;  %v330_v27 = vmul.f32 1.442695, %v1007_v21  ;;  %733 = vpow2.f32 %v348_v25  ;;  %v346_v34 = vmul.f32 1.442695, %v1013_v28 }
 0x1a0   :  { %v361_v23 = vsel %vm261_vm1, %v724_v19, 0.0  ;;  %v726_v24 = vpop.eup %725  ;;  %v407_v31 = vmul.f32 %v724_v19, %v311_v5  ;;  %v279_v32 = vpop.xlane.xlu1 %278 }
 0x1a1   :  { %362 = vadd.xlane.f32.xlu1 %v361_v23  ;;  %v385_v29 = vsel %vm261_vm1, %v726_v24, 0.0  ;;  %735 = vpow2.f32 %v330_v27  ;;  %v415_v37 = vmul.f32 %v726_v24, %v319_v4  ;;  %v276_v39 = vpop.xlane.xlu0 %275  ;;  %v1021_v40 = vsub.f32 %v964_v46, %v279_v32 }
 0x1a2   :  { %v425_v35 = vsel %vm261_vm1, %v407_v31, 0.0  ;;  %737 = vpow2.f32 %v346_v34  ;;  %v1026_v48 = vsub.f32 %v966_v47, %v276_v39 }
 0x1a3   :  { %v728_v26 = vpop.eup %727  ;;  %v449_v42 = vsel %vm261_vm1, %v415_v37, 0.0  ;;  %v336_v49 = vmul.f32 1.442695, %v1021_v40 }
 0x1a4   :  { %v358_v30 = vsel %vm261_vm1, %v728_v26, 0.0  ;;  %v406_v38 = vmul.f32 %v728_v26, %v310_v10  ;;  %v303_v41 = vpop.xlane.xlu1 %302  ;;  %v334_v59 = vmul.f32 1.442695, %v1026_v48 }
 0x1a5   :  { %386 = vadd.xlane.f32.xlu1 %v385_v29  ;;  %359 = vadd.xlane.f32.xlu0 %v358_v30  ;;  %v1030_v50 = vsub.f32 %v971_v52, %v303_v41  ;;  %v300_v46 = vpop.xlane.xlu0 %299  ;;  %739 = vpow2.f32 %v336_v49 }
 0x1a6   :  { %v422_v43 = vsel %vm261_vm1, %v406_v38, 0.0  ;;  %v1037_v63 = vsub.f32 %v973_v53, %v300_v46  ;;  %741 = vpow2.f32 %v334_v59 }
 0x1a7   :  { %v730_v33 = vpop.eup %729  ;;  %v352_v47 = vmul.f32 1.442695, %v1030_v50 }
 0x1a8   :  { %v382_v36 = vsel %vm261_vm1, %v730_v33, 0.0  ;;  %v414_v44 = vmul.f32 %v730_v33, %v318_v14  ;;  %v732_v45 = vpop.eup %731  ;;  %v285_v62 = vpop.xlane.xlu1 %284  ;;  %v350_v4 = vmul.f32 1.442695, %v1037_v63 }
 0x1a9   :  { %426 = vadd.xlane.f32.xlu1 %v425_v35  ;;  %383 = vadd.xlane.f32.xlu0 %v382_v36  ;;  %v734_v51 = vpop.eup %733  ;;  %v367_v54 = vsel %vm261_vm1, %v732_v45, 0.0  ;;  %v409_v1 = vmul.f32 %v732_v45, %v313_v16  ;;  %v282_v3 = vpop.xlane.xlu0 %281  ;;  %743 = vpow2.f32 %v352_v47  ;;  %v317_v5 = vsub.f32 %v979_v56, %v285_v62 }
 0x1aa   :  { %v446_v55 = vsel %vm261_vm1, %v414_v44, 0.0  ;;  %v391_v52 = vsel %vm261_vm1, %v734_v51, 0.0  ;;  %v417_v8 = vmul.f32 %v734_v51, %v1005_v18  ;;  %v316_v10 = vsub.f32 %v981_v57, %v282_v3 }
 0x1ab   :  { %v736_v58 = vpop.eup %735  ;;  %v431_v7 = vsel %vm261_vm1, %v409_v1, 0.0  ;;  %745 = vpow2.f32 %v350_v4  ;;  %v340_v11 = vmul.f32 1.442695, %v317_v5 }
 0x1ac   :  { %v364_v0 = vsel %vm261_vm1, %v736_v58, 0.0  ;;  %v738_v2 = vpop.eup %737  ;;  %v309_v6 = vpop.xlane.xlu1 %308  ;;  %v408_v9 = vmul.f32 %v736_v58, %v1007_v21  ;;  %v455_v56 = vsel %vm261_vm1, %v417_v8, 0.0  ;;  %v338_v17 = vmul.f32 1.442695, %v316_v10 }
 0x1ad   :  { %450 = vadd.xlane.f32.xlu1 %v449_v42  ;;  %423 = vadd.xlane.f32.xlu0 %v422_v43  ;;  %v388_v53 = vsel %vm261_vm1, %v738_v2, 0.0  ;;  %v325_v12 = vsub.f32 %v987_v60, %v309_v6  ;;  %v306_v13 = vpop.xlane.xlu0 %305  ;;  %v416_v15 = vmul.f32 %v738_v2, %v1013_v28  ;;  %747 = vpow2.f32 %v340_v11 }
 0x1ae   :  { %v428_v14 = vsel %vm261_vm1, %v408_v9, 0.0  ;;  %v324_v19 = vsub.f32 %v989_v61, %v306_v13  ;;  %749 = vpow2.f32 %v338_v17 }
 0x1af   :  { %v740_v16 = vpop.eup %739  ;;  %v356_v18 = vmul.f32 1.442695, %v325_v12  ;;  %v452_v60 = vsel %vm261_vm1, %v416_v15, 0.0 }
 0x1b0   :  { %v742_v57 = vpop.eup %741  ;;  %v373_v20 = vsel %vm261_vm1, %v740_v16, 0.0  ;;  %v354_v22 = vmul.f32 1.442695, %v324_v19  ;;  %v411_v25 = vmul.f32 %v740_v16, %v1021_v40 }
 0x1b1   :  { %368 = vadd.xlane.f32.xlu1 %v367_v54  ;;  %447 = vadd.xlane.f32.xlu0 %v446_v55  ;;  %751 = vpow2.f32 %v356_v18  ;;  %v370_v24 = vsel %vm261_vm1, %v742_v57, 0.0  ;;  %v410_v28 = vmul.f32 %v742_v57, %v1026_v48 }
 0x1b2   :  { %753 = vpow2.f32 %v354_v22  ;;  %v437_v61 = vsel %vm261_vm1, %v411_v25, 0.0 }
 0x1b3   :  { %v744_v21 = vpop.eup %743  ;;  %v434_v32 = vsel %vm261_vm1, %v410_v28, 0.0 }
 0x1b4   :  { %v397_v23 = vsel %vm261_vm1, %v744_v21, 0.0  ;;  %v419_v36 = vmul.f32 %v744_v21, %v1030_v50 }
 0x1b5   :  { %392 = vadd.xlane.f32.xlu1 %v391_v52  ;;  %365 = vadd.xlane.f32.xlu0 %v364_v0  ;;  %v746_v26 = vpop.eup %745 }
 0x1b6   :  { %v394_v27 = vsel %vm261_vm1, %v746_v26, 0.0  ;;  %v461_v38 = vsel %vm261_vm1, %v419_v36, 0.0  ;;  %v418_v41 = vmul.f32 %v746_v26, %v1037_v63 }
 0x1b7   :  { %v748_v29 = vpop.eup %747 }
 0x1b8   :  { %v750_v30 = vpop.eup %749  ;;  %v379_v31 = vsel %vm261_vm1, %v748_v29, 0.0  ;;  %v413_v40 = vmul.f32 %v748_v29, %v317_v5  ;;  %v458_v43 = vsel %vm261_vm1, %v418_v41, 0.0 }
 0x1b9   :  { %432 = vadd.xlane.f32.xlu1 %v431_v7  ;;  %389 = vadd.xlane.f32.xlu0 %v388_v53  ;;  %v376_v35 = vsel %vm261_vm1, %v750_v30, 0.0  ;;  %v412_v45 = vmul.f32 %v750_v30, %v316_v10 }
 0x1ba   :  { %v443_v42 = vsel %vm261_vm1, %v413_v40, 0.0 }
 0x1bb   :  { %v752_v33 = vpop.eup %751  ;;  %v440_v49 = vsel %vm261_vm1, %v412_v45, 0.0 }
 0x1bc   :  { %v403_v34 = vsel %vm261_vm1, %v752_v33, 0.0  ;;  %v754_v37 = vpop.eup %753  ;;  %v421_v44 = vmul.f32 %v752_v33, %v325_v12 }
 0x1bd   :  { %456 = vadd.xlane.f32.xlu1 %v455_v56  ;;  %429 = vadd.xlane.f32.xlu0 %v428_v14  ;;  %v400_v39 = vsel %vm261_vm1, %v754_v37, 0.0  ;;  %v420_v50 = vmul.f32 %v754_v37, %v324_v19 }
 0x1be   :  { %v467_v48 = vsel %vm261_vm1, %v421_v44, 0.0 }
 0x1bf   :  { %v464_v51 = vsel %vm261_vm1, %v420_v50, 0.0 }
 0x1c1   :  { %374 = vadd.xlane.f32.xlu1 %v373_v20  ;;  %453 = vadd.xlane.f32.xlu0 %v452_v60 }
 0x1c5   :  { %398 = vadd.xlane.f32.xlu1 %v397_v23  ;;  %371 = vadd.xlane.f32.xlu0 %v370_v24 }
 0x1c9   :  { %438 = vadd.xlane.f32.xlu1 %v437_v61  ;;  %395 = vadd.xlane.f32.xlu0 %v394_v27 }
 0x1cd   :  { %380 = vadd.xlane.f32.xlu1 %v379_v31  ;;  %435 = vadd.xlane.f32.xlu0 %v434_v32 }
 0x1d1   :  { %404 = vadd.xlane.f32.xlu1 %v403_v34  ;;  %377 = vadd.xlane.f32.xlu0 %v376_v35 }
 0x1d5   :  { %462 = vadd.xlane.f32.xlu1 %v461_v38  ;;  %401 = vadd.xlane.f32.xlu0 %v400_v39 }
 0x1d9   :  { %444 = vadd.xlane.f32.xlu1 %v443_v42  ;;  %459 = vadd.xlane.f32.xlu0 %v458_v43 }
 0x1dd   :  { %468 = vadd.xlane.f32.xlu1 %v467_v48  ;;  %441 = vadd.xlane.f32.xlu0 %v440_v49 }
 0x1e1   :  { %465 = vadd.xlane.f32.xlu0 %v464_v51 }
 0x22e   :  { %v363_v46 = vpop.xlane.xlu1 %362 }
 0x22f   :  { %755 = vlog2.f32 %v363_v46 }
 0x230   :  { %757 = vrcp.f32 %v363_v46 }
 0x232   :  { %v387_v54 = vpop.xlane.xlu1 %386  ;;  %v360_v55 = vpop.xlane.xlu0 %359 }
 0x233   :  { %759 = vlog2.f32 %v387_v54 }
 0x234   :  { %761 = vrcp.f32 %v387_v54 }
 0x235   :  { %763 = vlog2.f32 %v360_v55 }
 0x236   :  { %765 = vrcp.f32 %v360_v55  ;;  %v427_v58 = vpop.xlane.xlu1 %426  ;;  %v384_v59 = vpop.xlane.xlu0 %383 }
 0x237   :  { %767 = vlog2.f32 %v384_v59 }
 0x238   :  { %769 = vrcp.f32 %v384_v59 }
 0x239   :  { %v756_v62 = vpop.eup %755 }
 0x23a   :  { %v758_v47 = vpop.eup %757  ;;  %v451_v63 = vpop.xlane.xlu1 %450 }
 0x23b   :  { %v424_v52 = vpop.xlane.xlu0 %423 }
 0x23d   :  { %v760_v0 = vpop.eup %759 }
 0x23e   :  { %v762_v1 = vpop.eup %761  ;;  %v369_v2 = vpop.xlane.xlu1 %368 }
 0x23f   :  { %v448_v3 = vpop.xlane.xlu0 %447  ;;  %v764_v4 = vpop.eup %763  ;;  %771 = vlog2.f32 %v369_v2 }
 0x240   :  { %v766_v5 = vpop.eup %765  ;;  %v471_v6 = vmul.f32 0.6931472, %v764_v4  ;;  %773 = vrcp.f32 %v369_v2 }
 0x241   :  { %v768_v7 = vpop.eup %767  ;;  %v518_v53 = vmul.f32 %v766_v5, %v424_v52 }
 0x242   :  { %v770_v8 = vpop.eup %769  ;;  %v393_v9 = vpop.xlane.xlu1 %392 }
 0x243   :  { %v366_v10 = vpop.xlane.xlu0 %365  ;;  %v534_v11 = vsub.f32 %v471_v6, %v518_v53  ;;  %775 = vlog2.f32 %v393_v9 }
 0x244   :  { %777 = vrcp.f32 %v393_v9 }
 0x245   :  { %v550_v12 = vmul.f32 0.48089835, %v534_v11  ;;  %779 = vlog2.f32 %v366_v10 }
 0x246   :  { %v433_v13 = vpop.xlane.xlu1 %432  ;;  %781 = vrcp.f32 %v366_v10 }
 0x247   :  { %v390_v56 = vpop.xlane.xlu0 %389  ;;  %v566_v14 = vmax.f32 %v550_v12, 1e-09 }
 0x248   :  { %783 = vlog2.f32 %v390_v56 }
 0x249   :  { %v772_v15 = vpop.eup %771  ;;  %v582_v16 = vmin.f32 %v566_v14, 1.0  ;;  %785 = vrcp.f32 %v390_v56 }
 0x24a   :  { %v774_v17 = vpop.eup %773  ;;  %v457_v18 = vpop.xlane.xlu1 %456 }
 0x24b   :  { %v430_v19 = vpop.xlane.xlu0 %429  ;;  %599 = vst.msk [vmem:[#allocation6] sm:$0xff] %vm598_vm2, %v582_v16 }
 0x24d   :  { %v776_v57 = vpop.eup %775 }
 0x24e   :  { %v375_v20 = vpop.xlane.xlu1 %374  ;;  %v778_v21 = vpop.eup %777 }
 0x24f   :  { %v454_v60 = vpop.xlane.xlu0 %453  ;;  %787 = vlog2.f32 %v375_v20  ;;  %v780_v22 = vpop.eup %779 }
 0x250   :  { %789 = vrcp.f32 %v375_v20  ;;  %v782_v23 = vpop.eup %781 }
 0x252   :  { %v784_v24 = vpop.eup %783  ;;  %v632_v25 = vld [vmem:[#allocation6] sm:$0x3]  ;;  %v399_v26 = vpop.xlane.xlu1 %398 }
 0x253   :  { %v372_v61 = vpop.xlane.xlu0 %371  ;;  %v786_v27 = vpop.eup %785  ;;  %633 = vst [vmem:[%s1081_s3] sm:$0x3] %v632_v25  ;;  %791 = vlog2.f32 %v399_v26 }
 0x254   :  { %793 = vlog2.f32 %v372_v61 }
 0x255   :  { %795 = vrcp.f32 %v372_v61 }
 0x256   :  { %v439_v28 = vpop.xlane.xlu1 %438  ;;  %797 = vrcp.f32 %v399_v26 }
 0x257   :  { %v396_v29 = vpop.xlane.xlu0 %395 }
 0x258   :  { %799 = vlog2.f32 %v396_v29 }
 0x259   :  { %v788_v30 = vpop.eup %787  ;;  %801 = vrcp.f32 %v396_v29 }
 0x25a   :  { %v790_v31 = vpop.eup %789  ;;  %v381_v32 = vpop.xlane.xlu1 %380 }
 0x25b   :  { %v436_v33 = vpop.xlane.xlu0 %435  ;;  %803 = vlog2.f32 %v381_v32 }
 0x25c   :  { %805 = vrcp.f32 %v381_v32 }
 0x25d   :  { %v792_v34 = vpop.eup %791 }
 0x25e   :  { %v405_v35 = vpop.xlane.xlu1 %404  ;;  %v794_v37 = vpop.eup %793 }
 0x25f   :  { %v378_v36 = vpop.xlane.xlu0 %377  ;;  %807 = vlog2.f32 %v405_v35  ;;  %v796_v38 = vpop.eup %795 }
 0x260   :  { %809 = vrcp.f32 %v405_v35  ;;  %v798_v39 = vpop.eup %797 }
 0x261   :  { %811 = vlog2.f32 %v378_v36 }
 0x262   :  { %813 = vrcp.f32 %v378_v36  ;;  %v463_v40 = vpop.xlane.xlu1 %462  ;;  %v800_v42 = vpop.eup %799 }
 0x263   :  { %v402_v41 = vpop.xlane.xlu0 %401  ;;  %v802_v43 = vpop.eup %801 }
 0x264   :  { %815 = vlog2.f32 %v402_v41 }
 0x265   :  { %817 = vrcp.f32 %v402_v41  ;;  %v804_v44 = vpop.eup %803 }
 0x266   :  { %v806_v45 = vpop.eup %805  ;;  %v445_v48 = vpop.xlane.xlu1 %444 }
 0x267   :  { %v460_v49 = vpop.xlane.xlu0 %459 }
 0x269   :  { %v808_v50 = vpop.eup %807 }
 0x26a   :  { %v810_v51 = vpop.eup %809  ;;  %v469_v46 = vpop.xlane.xlu1 %468 }
 0x26b   :  { %v442_v54 = vpop.xlane.xlu0 %441  ;;  %v812_v55 = vpop.eup %811 }
 0x26c   :  { %v814_v58 = vpop.eup %813 }
 0x26e   :  { %v816_v59 = vpop.eup %815 }
 0x26f   :  { %v818_v62 = vpop.eup %817  ;;  %v466_v47 = vpop.xlane.xlu0 %465 }
 0x270   :  { %650 = vsyncpa [#allocation3], 1 }
 0x271   :  { %651 = vsyncpa [#allocation5], 1 }

</bundles_post_ra>
